<compile_context>
chip_gen: v5e
topology: v5e:2x2
jax: 0.10.0
libtpu: 0.0.40
codegen_flags: <defaults>
</compile_context>

<pallas_src>
import functools

import jax
import jax.numpy as jnp
from jax.experimental import pallas as pl
from jax.experimental.pallas import tpu as pltpu


def _round_up(n: int, m: int) -> int:
    return (n + m - 1) // m * m


def _mlp_kernel(x_ref, w1_ref, b1_ref, w2_ref, b2_ref, out_ref):
    x = x_ref[...]                        # (TB, In)   f32
    w1 = w1_ref[...]                      # (In, H)    f32
    tb, in_features = x.shape
    hidden = w1.shape[1]
    o_dim = out_ref.shape[1]              # true (unpadded) output width

    # ---- layer 1: x @ W1 + b1 ----
    if in_features <= 8:
        # Tiny contraction (K=3): a few VPU broadcast-FMAs beat MXU fill/drain.
        h = jnp.broadcast_to(b1_ref[...], (tb, hidden)).astype(jnp.float32)
        for k in range(in_features):      # static trace-time loop
            h = h + x[:, k:k + 1] * w1[k:k + 1, :]
    else:
        h = jnp.dot(x, w1, preferred_element_type=jnp.float32) + b1_ref[...]

    # ---- ReLU (VPU) ----
    h = jnp.maximum(h, 0.0)

    # ---- layer 2: h @ W2 + b2, all f32 for parity with the PyTorch model ----
    o = jnp.dot(h, w2_ref[...], preferred_element_type=jnp.float32)  # (TB, O_pad)
    o = o + b2_ref[...]

    # Slice the lane-padded result BEFORE the store: only the O useful columns
    # ever reach HBM (out_ref is (TB, O)).
    out_ref[...] = o[:, :o_dim].astype(out_ref.dtype)


@functools.partial(jax.jit, static_argnames=("block_b",))
def blackjack_forward(x, w1, b1, w2, b2, *, block_b=4096):
    """x: (B, In) f32; w1: (In, H); b1: (1, H); w2: (H, O); b2: (1, O)."""
    B, In = x.shape
    H = w1.shape[1]
    O = w2.shape[1]

    # W2/b2 are padded to 128 lanes only for the in-kernel MXU pass; padded
    # columns are zero and are sliced off inside the kernel before the store.
    O_pad = _round_up(max(O, 128), 128)
    w2p = jnp.zeros((H, O_pad), jnp.float32).at[:, :O].set(w2)
    b2p = jnp.zeros((1, O_pad), jnp.float32).at[:, :O].set(b2)

    # Batch tiling: pick the tile count first, then the smallest 8-aligned
    # tile that covers B -> avoids pathological padding (B=520 stays 520).
    num_tiles = max(1, pl.cdiv(B, block_b))
    if num_tiles == 1 and B >= 2048:
        num_tiles = 2                     # v7x megacore: give the 2nd TC work
    TB = _round_up(pl.cdiv(B, num_tiles), 8)
    B_pad = num_tiles * TB
    if B_pad != B:
        x = jnp.pad(x, ((0, B_pad - B), (0, 0)))

    out = pl.pallas_call(
        _mlp_kernel,
        out_shape=jax.ShapeDtypeStruct((B_pad, O), jnp.float32),
        grid=(num_tiles,),
        in_specs=[
            pl.BlockSpec((TB, In), lambda i: (i, 0)),     # x tiles advance
            pl.BlockSpec((In, H), lambda i: (0, 0)),      # weights stay resident
            pl.BlockSpec((1, H), lambda i: (0, 0)),
            pl.BlockSpec((H, O_pad), lambda i: (0, 0)),
            pl.BlockSpec((1, O_pad), lambda i: (0, 0)),
        ],
        out_specs=pl.BlockSpec((TB, O), lambda i: (i, 0)),
        compiler_params=pltpu.CompilerParams(
            dimension_semantics=("parallel",)),  # v7x: shard batch over 2 TCs
    )(x, w1, b1, w2p, b2p)

    return out[:B] if B_pad != B else out


def init_params(key, input_size, hidden_size, output_size):
    # Deterministic init mimicking nn.Linear's U(-1/sqrt(fan_in), 1/sqrt(fan_in)).
    k1, k2, k3, k4 = jax.random.split(key, 4)
    bound1 = 1.0 / jnp.sqrt(jnp.float32(input_size))
    bound2 = 1.0 / jnp.sqrt(jnp.float32(hidden_size))
    w1 = jax.random.uniform(k1, (input_size, hidden_size), jnp.float32,
                            -bound1, bound1)
    b1 = jax.random.uniform(k2, (1, hidden_size), jnp.float32, -bound1, bound1)
    w2 = jax.random.uniform(k3, (hidden_size, output_size), jnp.float32,
                            -bound2, bound2)
    b2 = jax.random.uniform(k4, (1, output_size), jnp.float32, -bound2, bound2)
    return w1, b1, w2, b2


def _reference(x, w1, b1, w2, b2):
    # Pure-JAX f32 reference: same math as the PyTorch forward.
    return jnp.maximum(x @ w1 + b1, 0.0) @ w2 + b2


if __name__ == "__main__":
    # Blackjack-ish sizes: state = (player sum, dealer card, usable ace),
    # hidden=32, actions=2 (hit / stand).
    input_size, hidden_size, output_size = 3, 32, 2

    key = jax.random.PRNGKey(0)
    kx, kp, kx2 = jax.random.split(key, 3)
    w1, b1, w2, b2 = init_params(kp, input_size, hidden_size, output_size)

    # Case 1: tiny batch of 8 states (single grid step, no padding).
    x_small = jax.random.normal(kx, (8, input_size), jnp.float32)
    out_small = jax.block_until_ready(
        blackjack_forward(x_small, w1, b1, w2, b2))
    ref_small = _reference(x_small, w1, b1, w2, b2)
    assert out_small.shape == (8, output_size)
    # All-f32 kernel -> tight tolerance vs. the f32 reference.
    assert jnp.allclose(out_small, ref_small, atol=1e-4, rtol=1e-4)

    # Case 2: batch of 250 (padded to 256 rows) to exercise the 8-row-aligned
    # batch padding path; padded rows are sliced off contiguously.
    x_mid = jax.random.normal(kx2, (250, input_size), jnp.float32)
    out_mid = jax.block_until_ready(
        blackjack_forward(x_mid, w1, b1, w2, b2))
    ref_mid = _reference(x_mid, w1, b1, w2, b2)
    assert out_mid.shape == (250, output_size)
    assert jnp.allclose(out_mid, ref_mid, atol=1e-4, rtol=1e-4)

    print("KERNEL_OK")
</pallas_src>

<mosaic_0001>
module attributes {stable_mosaic.version = 11 : i64} {
  func.func @_mlp_kernel(%arg0: i32, %arg1: memref<8x3xf32, #tpu.memory_space<vmem>>, %arg2: memref<3x32xf32, #tpu.memory_space<vmem>>, %arg3: memref<1x32xf32, #tpu.memory_space<vmem>>, %arg4: memref<32x128xf32, #tpu.memory_space<vmem>>, %arg5: memref<1x128xf32, #tpu.memory_space<vmem>>, %arg6: memref<8x2xf32, #tpu.memory_space<vmem>>) attributes {dimension_semantics = [#tpu.dimension_semantics<parallel>], iteration_bounds = array<i64: 1>, scalar_prefetch = 0 : i64, scratch_operands = 0 : i64, tpu.core_type = #tpu.core_type<tc>, window_params = [{transform_indices = @transform_0, window_bounds = array<i64: 8, 3>}, {pipeline_mode = #tpu.pipeline_mode<synchronous>, transform_indices = @transform_1, window_bounds = array<i64: 3, 32>}, {pipeline_mode = #tpu.pipeline_mode<synchronous>, transform_indices = @transform_2, window_bounds = array<i64: 1, 32>}, {pipeline_mode = #tpu.pipeline_mode<synchronous>, transform_indices = @transform_3, window_bounds = array<i64: 32, 128>}, {pipeline_mode = #tpu.pipeline_mode<synchronous>, transform_indices = @transform_4, window_bounds = array<i64: 1, 128>}, {transform_indices = @transform_5, window_bounds = array<i64: 8, 2>}]} {
    %c0 = arith.constant 0 : index
    %c0_0 = arith.constant 0 : index
    %0 = vector.load %arg1[%c0, %c0_0] : memref<8x3xf32, #tpu.memory_space<vmem>>, vector<8x3xf32>
    %c0_1 = arith.constant 0 : index
    %c0_2 = arith.constant 0 : index
    %1 = vector.load %arg2[%c0_1, %c0_2] : memref<3x32xf32, #tpu.memory_space<vmem>>, vector<3x32xf32>
    %c0_3 = arith.constant 0 : index
    %c0_4 = arith.constant 0 : index
    %2 = vector.load %arg3[%c0_3, %c0_4] : memref<1x32xf32, #tpu.memory_space<vmem>>, vector<1x32xf32>
    %3 = vector.shape_cast %2 : vector<1x32xf32> to vector<1x32xf32>
    %4 = vector.broadcast %3 : vector<1x32xf32> to vector<8x32xf32>
    %5 = vector.extract_strided_slice %0 {offsets = [0, 0], sizes = [8, 1], strides = [1, 1]} : vector<8x3xf32> to vector<8x1xf32>
    %6 = vector.extract_strided_slice %1 {offsets = [0, 0], sizes = [1, 32], strides = [1, 1]} : vector<3x32xf32> to vector<1x32xf32>
    %7 = vector.broadcast %5 : vector<8x1xf32> to vector<8x32xf32>
    %8 = vector.broadcast %6 : vector<1x32xf32> to vector<8x32xf32>
    %9 = arith.mulf %7, %8 : vector<8x32xf32>
    %10 = arith.addf %4, %9 : vector<8x32xf32>
    %11 = vector.extract_strided_slice %0 {offsets = [0, 1], sizes = [8, 1], strides = [1, 1]} : vector<8x3xf32> to vector<8x1xf32>
    %12 = vector.extract_strided_slice %1 {offsets = [1, 0], sizes = [1, 32], strides = [1, 1]} : vector<3x32xf32> to vector<1x32xf32>
    %13 = vector.broadcast %11 : vector<8x1xf32> to vector<8x32xf32>
    %14 = vector.broadcast %12 : vector<1x32xf32> to vector<8x32xf32>
    %15 = arith.mulf %13, %14 : vector<8x32xf32>
    %16 = arith.addf %10, %15 : vector<8x32xf32>
    %17 = vector.extract_strided_slice %0 {offsets = [0, 2], sizes = [8, 1], strides = [1, 1]} : vector<8x3xf32> to vector<8x1xf32>
    %18 = vector.extract_strided_slice %1 {offsets = [2, 0], sizes = [1, 32], strides = [1, 1]} : vector<3x32xf32> to vector<1x32xf32>
    %19 = vector.broadcast %17 : vector<8x1xf32> to vector<8x32xf32>
    %20 = vector.broadcast %18 : vector<1x32xf32> to vector<8x32xf32>
    %21 = arith.mulf %19, %20 : vector<8x32xf32>
    %22 = arith.addf %16, %21 : vector<8x32xf32>
    %cst = arith.constant 0.000000e+00 : f32
    %23 = vector.broadcast %cst : f32 to vector<8x32xf32>
    %24 = arith.maximumf %22, %23 : vector<8x32xf32>
    %c0_5 = arith.constant 0 : index
    %c0_6 = arith.constant 0 : index
    %25 = vector.load %arg4[%c0_5, %c0_6] : memref<32x128xf32, #tpu.memory_space<vmem>>, vector<32x128xf32>
    %cst_7 = arith.constant dense<0.000000e+00> : vector<8x128xf32>
    %26 = tpu.matmul %24, %25, %cst_7 {dimension_numbers = #tpu.dot_dimension_numbers<[1], [0], [0], [1], [0, 0, 1, 1], [], []>} : vector<8x32xf32>, vector<32x128xf32>, vector<8x128xf32> -> vector<8x128xf32>
    %c0_8 = arith.constant 0 : index
    %c0_9 = arith.constant 0 : index
    %27 = vector.load %arg5[%c0_8, %c0_9] : memref<1x128xf32, #tpu.memory_space<vmem>>, vector<1x128xf32>
    %28 = vector.broadcast %27 : vector<1x128xf32> to vector<8x128xf32>
    %29 = arith.addf %26, %28 : vector<8x128xf32>
    %30 = vector.extract_strided_slice %29 {offsets = [0, 0], sizes = [8, 2], strides = [1, 1]} : vector<8x128xf32> to vector<8x2xf32>
    %c0_10 = arith.constant 0 : index
    %c0_11 = arith.constant 0 : index
    %31 = vector.load %arg6[%c0_10, %c0_11] : memref<8x2xf32, #tpu.memory_space<vmem>>, vector<8x2xf32>
    tpu.vector_store %arg6[%c0_10, %c0_11], %30 {strides = array<i32>} : memref<8x2xf32, #tpu.memory_space<vmem>>, vector<8x2xf32>,
    return
  }
  func.func @transform_0(%arg0: i32) -> (i32, i32) {
    %c0_i32 = arith.constant 0 : i32
    %c0_i32_0 = arith.constant 0 : i32
    return %arg0, %c0_i32 : i32, i32
  }
  func.func @transform_1(%arg0: i32) -> (i32, i32) {
    %c0_i32 = arith.constant 0 : i32
    %c0_i32_0 = arith.constant 0 : i32
    %c0_i32_1 = arith.constant 0 : i32
    return %c0_i32, %c0_i32_0 : i32, i32
  }
  func.func @transform_2(%arg0: i32) -> (i32, i32) {
    %c0_i32 = arith.constant 0 : i32
    %c0_i32_0 = arith.constant 0 : i32
    %c0_i32_1 = arith.constant 0 : i32
    return %c0_i32, %c0_i32_0 : i32, i32
  }
  func.func @transform_3(%arg0: i32) -> (i32, i32) {
    %c0_i32 = arith.constant 0 : i32
    %c0_i32_0 = arith.constant 0 : i32
    %c0_i32_1 = arith.constant 0 : i32
    return %c0_i32, %c0_i32_0 : i32, i32
  }
  func.func @transform_4(%arg0: i32) -> (i32, i32) {
    %c0_i32 = arith.constant 0 : i32
    %c0_i32_0 = arith.constant 0 : i32
    %c0_i32_1 = arith.constant 0 : i32
    return %c0_i32, %c0_i32_0 : i32, i32
  }
  func.func @transform_5(%arg0: i32) -> (i32, i32) {
    %c0_i32 = arith.constant 0 : i32
    %c0_i32_0 = arith.constant 0 : i32
    return %arg0, %c0_i32 : i32, i32
  }
}

</mosaic_0001>

<bundles_post_ra>
// kernel: blackjack_forward.1
= control target key start
LH: loop header
LB: loop body
LE: loop exit
PB: predicated region body
PF: predicated region fallthrough
CT: control target
= control target key end

     0   :  { %v97_v0 = vmov 0   ;;  %v98_v2 = vmov 2   ;;  %v99_v3 = vmov 1   ;;  %vm57_vm0 = vcmask 261120   ;;  %s157_s0 = inlined_call_operand.vmem [shape: f32[8,3], index: 0, kind: input, shape index: {}]   ;;  %s158_s2 = inlined_call_operand.vmem [shape: f32[1,32], index: 2, kind: input, shape index: {}]   ;;  %s159_s4 = inlined_call_operand.vmem [shape: f32[1,128], index: 4, kind: input, shape index: {}]   ;;  %s160_s3 = inlined_call_operand.vmem [shape: f32[32,128], index: 3, kind: input, shape index: {}]   ;;  %s161_s1 = inlined_call_operand.vmem [shape: f32[3,32], index: 1, kind: input, shape index: {}]   ;;  %s162_s5 = inlined_call_operand.vmem [shape: f32[8,2], index: 5, kind: output, shape index: {}]  }
   0x1   :  { %91 = vset.pattern.permute.xlu0 %v97_v0  ;;  %v20_v1 = vld [vmem:[%s157_s0] sm:$0xff]  ;;  %93 = vset.pattern.permute.xlu1 %v98_v2  ;;  %v52_v4 = vld [vmem:[%s160_s3 + $0x18] sm:$0xff]  ;;  %v51_v5 = vld [vmem:[%s160_s3 + $0x10] sm:$0xff]  ;;  %vm81_vm1 = vcmask 15360  }
   0x2   :  { %28 = vperm.xlu0 %91, %v20_v1   ;;  %42 = vperm.xlu1 %93, %v20_v1   ;;  %v50_v6 = vld [vmem:[%s160_s3 + $0x8] sm:$0xff]  ;;  %v49_v7 = vld [vmem:[%s160_s3] sm:$0xff] }
   0x3   :  { %73 = vmatpush.msra.mxu0 %v52_v4  ;;  %v21_v8 = vld [vmem:[%s161_s1] sm:$0x7] }
   0x4   :  { %v31_v10 = vperm.slane %v21_v8, 0  ;;  %v95_v11 = vld [vmem:[%s158_s2] ss:$0 sm:$0xff]  ;;  %v38_v13 = vperm.slane %v21_v8, 1  ;;  %v45_v14 = vperm.slane %v21_v8, 2 }
   0x5   :  { %74 = vmatpush.msra.mxu0 %v51_v5  ;;  %v96_v23 = vld [vmem:[%s159_s4] ss:$0 sm:$0xff] }
   0x7   :  { %75 = vmatpush.msra.mxu0 %v50_v6 }
   0x9   :  { %76 = vmatpush.msra.mxu0 %v49_v7 }
   0xa   :  { %92 = vset.pattern.permute.xlu0 %v99_v3 }
   0xb   :  { %35 = vperm.xlu0 %92, %v20_v1  }
  0x13   :  { %94 = vset.pattern.permute.xlu0 %v98_v2 }
  0x74   :  { %v29_v9 = vpop.permute.xlu0 %28  ;;  %v43_v15 = vpop.permute.xlu1 %42 }
  0x75   :  { %v32_v12 = vmul.f32 %v31_v10, %v29_v9  ;;  %v46_v19 = vmul.f32 %v45_v14, %v43_v15 }
  0x77   :  { %v33_v17 = vadd.f32 %v95_v11, %v32_v12 }
  0x7d   :  { %v36_v16 = vpop.permute.xlu0 %35 }
  0x7e   :  { %v39_v18 = vmul.f32 %v38_v13, %v36_v16 }
  0x80   :  { %v40_v20 = vadd.f32 %v39_v18, %v33_v17 }
  0x82   :  { %v47_v21 = vadd.f32 %v46_v19, %v40_v20 }
  0x84   :  { %v48_v22 = vmax.f32 %v47_v21, 0.0 }
  0x86   :  { %87 = vmatmul.msk.f32.vlgmr.msra.gmra.mxu0 %vm57_vm0, %v48_v22 }
 0x103   :  { %v78_v24 = vpop.f32.mrf.mxu0 }
 0x104   :  { %v79_v25 = vadd.f32 %v96_v23, %v78_v24 }
 0x106   :  { %82 = vst.msk [vmem:[%s162_s5] sm:$0xff] %vm81_vm1, %v79_v25 }

</bundles_post_ra>
